<compile_context>
chip_gen: v6e
topology: v6e:2x2x1
jax: 0.10.0
libtpu: 0.0.40
codegen_flags: <defaults>
</compile_context>

<pallas_src>
import functools

import jax
import jax.numpy as jnp
from jax.experimental import pallas as pl
from jax.experimental.pallas import tpu as pltpu


def _round_up(x, m):
    return ((x + m - 1) // m) * m


def _cdiv(a, b):
    return -(-a // b)


def _adastd_kernel(c_ref, s_ref, o_ref, *, eps, nc, ns):
    # c_ref: (rb, nc), s_ref: (rb, ns), o_ref: (rb, nc)
    x = c_ref[...]          # native dtype (f32 or bf16)
    s = s_ref[...]

    ones_c = jnp.ones((nc, 1), dtype=x.dtype)
    ones_s = jnp.ones((ns, 1), dtype=s.dtype)

    # Row means via MXU reductions (f32 accumulation, (rb, 1) results).
    c_mean = jnp.dot(x, ones_c, preferred_element_type=jnp.float32) * (1.0 / nc)
    s_mean = jnp.dot(s, ones_s, preferred_element_type=jnp.float32) * (1.0 / ns)

    # Mean-centered (two-pass) variance, ddof=1.  Centering is done in the
    # input dtype so bf16 inputs never materialize an f32 copy of the whole
    # tile; only the (rb, 1) statistics are kept in f32.
    dc = x - c_mean.astype(x.dtype)
    ds = s - s_mean.astype(s.dtype)
    # max(n-1, 1) avoids a trace-time div-by-zero for degenerate 1-pixel maps
    # (torch.var(unbiased=True) would return NaN there -- intentional divergence).
    c_var = jnp.dot(dc * dc, ones_c, preferred_element_type=jnp.float32) * (
        1.0 / max(nc - 1, 1))
    s_var = jnp.dot(ds * ds, ones_s, preferred_element_type=jnp.float32) * (
        1.0 / max(ns - 1, 1))

    # out = c / sqrt(c_var + eps) * sqrt(s_var + eps); fold into one (rb, 1)
    # scale so the per-element hot path is a single multiply.
    scale = jnp.sqrt((s_var + eps) / (c_var + eps))
    o_ref[...] = (x * scale.astype(x.dtype)).astype(o_ref.dtype)


def adastd(content, style, *, eps=1e-5):
    """AdaStd: rescale content by per-(batch, channel) style std.

    content: (B, C, Hc, Wc), style: (B, C, Hs, Ws). Returns (B, C, Hc, Wc).
    """
    B, C, Hc, Wc = content.shape
    Bs, Cs, Hs, Ws = style.shape
    assert (B, C) == (Bs, Cs), "content/style batch & channel dims must match"

    nrows = B * C
    nc = Hc * Wc
    ns = Hs * Ws

    c2d = content.reshape(nrows, nc)    # contiguous view, no extra HBM pass
    s2d = style.reshape(nrows, ns)

    c_item = jnp.dtype(content.dtype).itemsize
    s_item = jnp.dtype(style.dtype).itemsize
    # Sublane tile: 8 rows for 4-byte dtypes, 16 for bf16, 32 for int8/fp8.
    sub = max(8, 32 // min(c_item, s_item))

    # ---- Generation-aware VMEM limit & step sizing ---------------------------
    vmem_phys = 64 * 1024 * 1024                       # v7x-safe fallback
    try:
        vmem_phys = int(pltpu.get_tpu_info().vmem_capacity_bytes)
    except Exception:
        pass
    if vmem_phys < 32 * 1024 * 1024:                   # defensive sanity clamp
        vmem_phys = 64 * 1024 * 1024
    vmem_limit = (vmem_phys * 3) // 4                  # ~48 MiB v7x, ~96 MiB v5e/v6e
    vmem_budget = max(vmem_limit - 8 * 1024 * 1024, 4 * 1024 * 1024)

    if vmem_phys <= 64 * 1024 * 1024:
        # v7x: 3.2 TB/s HBM -> bigger steps amortize the ~0.35 us/step overhead;
        # 2 TensorCores -> keep >= 2 steps per core when forcing a split.
        target_step_bytes = 12 * 1024 * 1024
        min_split = 4
    else:
        # v5e/v6e: ~6 MiB is already ~5-7 us of DMA, step overhead < 5%.
        target_step_bytes = 6 * 1024 * 1024
        min_split = 2

    # Per-row costs: HBM traffic (content in + out, style in) and VMEM footprint
    # (double-buffered pipeline buffers + centered temps inside the body).
    hbm_bytes_per_row = 2 * nc * c_item + ns * s_item
    vmem_bytes_per_row = (2 * (2 * nc * c_item + ns * s_item)
                          + nc * c_item + ns * s_item)

    rb = min(target_step_bytes // max(hbm_bytes_per_row, 1),
             vmem_budget // max(vmem_bytes_per_row, 1))
    rb = max((rb // sub) * sub, sub)
    # TODO(synk): for huge H*W where even `sub` rows overflow the VMEM budget,
    # add a lane (H*W) tile axis with a two-phase accumulate-then-scale pass.
    rb = min(rb, _round_up(nrows, sub))

    g = _cdiv(nrows, rb)
    if g < min_split and nrows > sub:
        # Split into enough steps to keep every TensorCore busy with pipelined
        # (prefetch-overlapped) work.
        g = min(min_split, _cdiv(nrows, sub))
        rb = _round_up(_cdiv(nrows, g), sub)
        g = _cdiv(nrows, rb)

    # TODO(synk): when H*W < 128 and B*C >= 128, a transposed (H*W-on-sublanes,
    # B*C-on-lanes) layout gives unmasked lane-dense stores, but it needs a
    # different external layout to avoid an extra wrapper-side transpose pass.
    kernel = functools.partial(_adastd_kernel, eps=float(eps), nc=nc, ns=ns)

    out2d = pl.pallas_call(
        kernel,
        out_shape=jax.ShapeDtypeStruct((nrows, nc), content.dtype),
        grid_spec=pltpu.PrefetchScalarGridSpec(
            num_scalar_prefetch=0,
            grid=(g,),
            in_specs=[
                pl.BlockSpec((rb, nc), lambda i: (i, 0)),
                pl.BlockSpec((rb, ns), lambda i: (i, 0)),
            ],
            out_specs=pl.BlockSpec((rb, nc), lambda i: (i, 0)),
        ),
        compiler_params=pltpu.CompilerParams(
            dimension_semantics=("parallel",),
            vmem_limit_bytes=int(vmem_limit),
        ),
    )(c2d, s2d)

    return out2d.reshape(B, C, Hc, Wc)


def _adastd_reference(content, style, eps=1e-5):
    B, C, _, _ = content.shape
    c = content.reshape(B, C, -1).astype(jnp.float32)
    s = style.reshape(B, C, -1).astype(jnp.float32)
    c_std = jnp.sqrt(jnp.var(c, axis=2, ddof=1) + eps)[:, :, None, None]
    s_std = jnp.sqrt(jnp.var(s, axis=2, ddof=1) + eps)[:, :, None, None]
    out = content.astype(jnp.float32) / c_std * s_std
    return out.astype(content.dtype)


if __name__ == "__main__":
    key = jax.random.PRNGKey(0)
    k1, k2, k3, k4, k5, k6 = jax.random.split(key, 6)

    # Case 1: aligned rows (B*C == 8), 16x16 content vs 8x8 style.
    B, C, Hc, Wc, Hs, Ws = 2, 4, 16, 16, 8, 8
    content = jax.random.normal(k1, (B, C, Hc, Wc), dtype=jnp.float32)
    style = jax.random.normal(k2, (B, C, Hs, Ws), dtype=jnp.float32) * 2.0 + 0.5
    out = jax.block_until_ready(adastd(content, style, eps=1e-5))
    ref = _adastd_reference(content, style, eps=1e-5)
    assert out.shape == (B, C, Hc, Wc)
    assert jnp.allclose(out, ref, atol=1e-4, rtol=1e-4), "case 1 mismatch vs reference"

    # Case 2: ragged rows (B*C == 15) -> multi-step grid whose final row block
    # is ragged and handled by Pallas (no wrapper pad / slice copies).
    B2, C2 = 3, 5
    content2 = jax.random.normal(k3, (B2, C2, 16, 8), dtype=jnp.float32) * 0.7 + 1.0
    style2 = jax.random.normal(k4, (B2, C2, 8, 8), dtype=jnp.float32) * 1.5 - 0.25
    out2 = jax.block_until_ready(adastd(content2, style2, eps=1e-5))
    ref2 = _adastd_reference(content2, style2, eps=1e-5)
    assert out2.shape == (B2, C2, 16, 8)
    assert jnp.allclose(out2, ref2, atol=1e-4, rtol=1e-4), "case 2 mismatch vs reference"

    # Case 3: bf16 path (big temps stay bf16, stats in f32); loose tolerance.
    B3, C3 = 2, 8
    content3 = (jax.random.normal(k5, (B3, C3, 16, 16), dtype=jnp.float32) * 0.7
                + 1.0).astype(jnp.bfloat16)
    style3 = (jax.random.normal(k6, (B3, C3, 8, 8), dtype=jnp.float32) * 1.5
              + 0.5).astype(jnp.bfloat16)
    out3 = jax.block_until_ready(adastd(content3, style3, eps=1e-5))
    ref3 = _adastd_reference(content3, style3, eps=1e-5)
    assert out3.shape == (B3, C3, 16, 16)
    assert out3.dtype == jnp.bfloat16
    assert jnp.allclose(out3.astype(jnp.float32), ref3.astype(jnp.float32),
                        atol=5e-2, rtol=5e-2), "case 3 mismatch vs reference"

    print("KERNEL_OK")
</pallas_src>

<mosaic_0001>
module attributes {stable_mosaic.version = 11 : i64} {
  func.func @_adastd_kernel(%arg0: i32, %arg1: memref<8x256xf32, #tpu.memory_space<vmem>>, %arg2: memref<8x64xf32, #tpu.memory_space<vmem>>, %arg3: memref<8x256xf32, #tpu.memory_space<vmem>>) attributes {dimension_semantics = [#tpu.dimension_semantics<parallel>], iteration_bounds = array<i64: 1>, scalar_prefetch = 0 : i64, scratch_operands = 0 : i64, tpu.core_type = #tpu.core_type<tc>, window_params = [{transform_indices = @transform_0, window_bounds = array<i64: 8, 256>}, {transform_indices = @transform_1, window_bounds = array<i64: 8, 64>}, {transform_indices = @transform_2, window_bounds = array<i64: 8, 256>}]} {
    %c0 = arith.constant 0 : index
    %c0_0 = arith.constant 0 : index
    %0 = vector.load %arg1[%c0, %c0_0] : memref<8x256xf32, #tpu.memory_space<vmem>>, vector<8x256xf32>
    %c0_1 = arith.constant 0 : index
    %c0_2 = arith.constant 0 : index
    %1 = vector.load %arg2[%c0_1, %c0_2] : memref<8x64xf32, #tpu.memory_space<vmem>>, vector<8x64xf32>
    %cst = arith.constant 1.000000e+00 : f32
    %2 = vector.broadcast %cst : f32 to vector<256x1xf32>
    %cst_3 = arith.constant 1.000000e+00 : f32
    %3 = vector.broadcast %cst_3 : f32 to vector<64x1xf32>
    %cst_4 = arith.constant dense<0.000000e+00> : vector<8x1xf32>
    %4 = tpu.matmul %0, %2, %cst_4 {dimension_numbers = #tpu.dot_dimension_numbers<[1], [0], [0], [1], [0, 0, 1, 1], [], []>} : vector<8x256xf32>, vector<256x1xf32>, vector<8x1xf32> -> vector<8x1xf32>
    %cst_5 = arith.constant 3.906250e-03 : f32
    %5 = vector.broadcast %cst_5 : f32 to vector<8x1xf32>
    %6 = arith.mulf %4, %5 : vector<8x1xf32>
    %cst_6 = arith.constant dense<0.000000e+00> : vector<8x1xf32>
    %7 = tpu.matmul %1, %3, %cst_6 {dimension_numbers = #tpu.dot_dimension_numbers<[1], [0], [0], [1], [0, 0, 1, 1], [], []>} : vector<8x64xf32>, vector<64x1xf32>, vector<8x1xf32> -> vector<8x1xf32>
    %cst_7 = arith.constant 1.562500e-02 : f32
    %8 = vector.broadcast %cst_7 : f32 to vector<8x1xf32>
    %9 = arith.mulf %7, %8 : vector<8x1xf32>
    %10 = vector.broadcast %6 : vector<8x1xf32> to vector<8x256xf32>
    %11 = arith.subf %0, %10 : vector<8x256xf32>
    %12 = vector.broadcast %9 : vector<8x1xf32> to vector<8x64xf32>
    %13 = arith.subf %1, %12 : vector<8x64xf32>
    %14 = arith.mulf %11, %11 : vector<8x256xf32>
    %cst_8 = arith.constant dense<0.000000e+00> : vector<8x1xf32>
    %15 = tpu.matmul %14, %2, %cst_8 {dimension_numbers = #tpu.dot_dimension_numbers<[1], [0], [0], [1], [0, 0, 1, 1], [], []>} : vector<8x256xf32>, vector<256x1xf32>, vector<8x1xf32> -> vector<8x1xf32>
    %cst_9 = arith.constant 0.00392156886 : f32
    %16 = vector.broadcast %cst_9 : f32 to vector<8x1xf32>
    %17 = arith.mulf %15, %16 : vector<8x1xf32>
    %18 = arith.mulf %13, %13 : vector<8x64xf32>
    %cst_10 = arith.constant dense<0.000000e+00> : vector<8x1xf32>
    %19 = tpu.matmul %18, %3, %cst_10 {dimension_numbers = #tpu.dot_dimension_numbers<[1], [0], [0], [1], [0, 0, 1, 1], [], []>} : vector<8x64xf32>, vector<64x1xf32>, vector<8x1xf32> -> vector<8x1xf32>
    %cst_11 = arith.constant 0.0158730168 : f32
    %20 = vector.broadcast %cst_11 : f32 to vector<8x1xf32>
    %21 = arith.mulf %19, %20 : vector<8x1xf32>
    %cst_12 = arith.constant 9.99999974E-6 : f32
    %22 = vector.broadcast %cst_12 : f32 to vector<8x1xf32>
    %23 = arith.addf %21, %22 : vector<8x1xf32>
    %cst_13 = arith.constant 9.99999974E-6 : f32
    %24 = vector.broadcast %cst_13 : f32 to vector<8x1xf32>
    %25 = arith.addf %17, %24 : vector<8x1xf32>
    %26 = arith.divf %23, %25 : vector<8x1xf32>
    %27 = math.sqrt %26 : vector<8x1xf32>
    %28 = vector.broadcast %27 : vector<8x1xf32> to vector<8x256xf32>
    %29 = arith.mulf %0, %28 : vector<8x256xf32>
    %c0_14 = arith.constant 0 : index
    %c0_15 = arith.constant 0 : index
    %30 = vector.load %arg3[%c0_14, %c0_15] : memref<8x256xf32, #tpu.memory_space<vmem>>, vector<8x256xf32>
    tpu.vector_store %arg3[%c0_14, %c0_15], %29 {strides = array<i32>} : memref<8x256xf32, #tpu.memory_space<vmem>>, vector<8x256xf32>,
    return
  }
  func.func @transform_0(%arg0: i32) -> (i32, i32) {
    %c0_i32 = arith.constant 0 : i32
    %c0_i32_0 = arith.constant 0 : i32
    return %arg0, %c0_i32 : i32, i32
  }
  func.func @transform_1(%arg0: i32) -> (i32, i32) {
    %c0_i32 = arith.constant 0 : i32
    %c0_i32_0 = arith.constant 0 : i32
    return %arg0, %c0_i32 : i32, i32
  }
  func.func @transform_2(%arg0: i32) -> (i32, i32) {
    %c0_i32 = arith.constant 0 : i32
    %c0_i32_0 = arith.constant 0 : i32
    return %arg0, %c0_i32 : i32, i32
  }
}

</mosaic_0001>

<bundles_post_ra>
// kernel: tpu_custom_call.1
= control target key start
LH: loop header
LB: loop body
LE: loop exit
PB: predicated region body
PF: predicated region fallthrough
CT: control target
= control target key end

     0   :  { %7 = vsyncpa [#allocation3], 0  ;;  %s736_s0 = inlined_call_operand.hbm [shape: f32[8,256], index: 0, kind: input, shape index: {}]   ;;  %s737_s1 = inlined_call_operand.hbm [shape: f32[8,64], index: 1, kind: input, shape index: {}]   ;;  %s738_s2 = inlined_call_operand.hbm [shape: f32[8,256], index: 2, kind: output, shape index: {}]  }
   0x1   :  { %8 = vsyncpa [#allocation6], 0 }
   0x2   :  { %9 = vsyncpa [#allocation4], 0  ;;  %s589_s9 = smov [#allocation2]   ;;  %s590_s11 = smov [#allocation5]  }
   0x3   :  { %s16_s10 = sshll.u32 %s589_s9, 4  ;;  %s26_s12 = sshll.u32 %s590_s11, 4  ;;  %s17_s10 = int_to_ptr.vmem [resolvable:$true] %s16_s10  ;;  %s27_s12 = int_to_ptr.vmem [resolvable:$true] %s26_s12 }
   0x4   :  { %s531_s13 = scalar_lea.vmem %s17_s10, 256  ;;  %p536_p1 = scmp.lt.s32.totalorder %s17_s10, %s17_s10 }
   0x5   :  { %p532_p0 = scmp.ne.s32.totalorder %s17_s10, %s531_s13  ;;  %p537_p2 = scmp.lt.s32.totalorder %s531_s13, %s531_s13 }
   0x7   :  { %p538_p3 = por %p537_p2, %p536_p1 }
   0x9   :  { %p539_p4 = pnand %p538_p3, %p532_p0 }
   0xb   :  { %542 = shalt.err (!%p539_p4)
}
   0xc   :  { %19 = dma.hbm_to_vmem [thread:$0]  %s736_s0, 256, %s17_s10, [#allocation3]  }
   0xd   :  { %s551_s16 = scalar_lea.vmem %s27_s12, 128  ;;  %p556_p6 = scmp.lt.s32.totalorder %s27_s12, %s27_s12 }
   0xe   :  { %p552_p5 = scmp.ne.s32.totalorder %s27_s12, %s551_s16  ;;  %p557_p7 = scmp.lt.s32.totalorder %s551_s16, %s551_s16 }
  0x10   :  { %p558_p8 = por %p557_p7, %p556_p6 }
  0x12   :  { %p559_p9 = pnand %p558_p8, %p552_p5 }
  0x14   :  { %562 = shalt.err (!%p559_p9)
}
  0x15   :  { %29 = dma.hbm_to_vmem [thread:$0]  %s737_s1, 128, %s27_s12, [#allocation6]  }
  0x16   :  { %583 = dma.done.wait [#allocation3], 256  }
  0x17   :  { %584 = vsyncadd [#allocation3], 4294967040 }
  0x18   :  { %585 = dma.done.wait [#allocation6], 128  }
  0x19   :  { %586 = vsyncadd [#allocation6], 4294967168  ;;  %v591_v0 = vmov 1.0   ;;  %v592_v1 = vmov 0.0   ;;  %v631_v2 = vld [vmem:[#allocation2 + $0x8] sm:$0xff]  ;;  %v651_v3 = vld [vmem:[#allocation5] sm:$0xff] }
  0x1a   :  { %384 = vmatprep.subr.mxu0 %v591_v0  ;;  %472 = vmatprep.subr.mxu1 %v592_v1  ;;  %vm110_vm0 = vcmask 523264   ;;  %vm593_vm1 = vmmov 0   ;;  %v682_v4 = vld [vmem:[#allocation2] sm:$0xff]  ;;  %v594_v5 = vmov 0   ;;  %s595_s0 = smov [#allocation7]  }
  0x1b   :  { %385 = vmatpush3.msra.mxu0 %v591_v0  ;;  %473 = vmatpush3.msra.mxu1 %v591_v0  ;;  %s372_s1 = sshll.u32 %s595_s0, 4  ;;  %s373_s1 = int_to_ptr.vmem [resolvable:$true] %s372_s1 }
  0x1c   :  { %386 = vmatprep.subr.mxu0 %v591_v0  ;;  %474 = vmatprep.subr.mxu1 %v592_v1  ;;  %s563_s19 = scalar_lea.vmem %s373_s1, 256  ;;  %p568_p11 = scmp.lt.s32.totalorder %s373_s1, %s373_s1 }
  0x1d   :  { %387 = vmatpush3.msra.mxu0 %v591_v0  ;;  %475 = vmatpush3.msra.mxu1 %v591_v0  ;;  %p564_p10 = scmp.ne.s32.totalorder %s373_s1, %s563_s19  ;;  %p569_p12 = scmp.lt.s32.totalorder %s563_s19, %s563_s19 }
  0x1e   :  { %388 = vmatprep.subr.mxu0 %v591_v0  ;;  %476 = vmatprep.subr.mxu1 %v592_v1 }
  0x1f   :  { %389 = vmatpush3.msra.mxu0 %v591_v0  ;;  %477 = vmatpush3.msra.mxu1 %v591_v0  ;;  %p570_p13 = por %p569_p12, %p568_p11 }
  0x20   :  { %390 = vmatprep.subr.mxu0 %v591_v0  ;;  %478 = vmatprep.subr.mxu1 %v592_v1 }
  0x21   :  { %391 = vmatpush3.msra.mxu0 %v591_v0  ;;  %103 = vmatprep.mubr.f32.mxu0 %v631_v2  ;;  %p571_p0 = pnand %p570_p13, %p564_p10 }
  0x22   :  { %392 = vmatprep.subr.mxu0 %v591_v0  ;;  %479 = vmatpush3.msra.mxu1 %v591_v0 }
  0x23   :  { %393 = vmatpush3.msra.mxu0 %v591_v0  ;;  %480 = vmatprep.subr.mxu1 %v592_v1 }
  0x24   :  { %394 = vmatprep.subr.mxu0 %v591_v0  ;;  %481 = vmatpush3.msra.mxu1 %v591_v0 }
  0x25   :  { %395 = vmatpush3.msra.mxu0 %v591_v0  ;;  %482 = vmatprep.subr.mxu1 %v592_v1 }
  0x26   :  { %396 = vmatprep.subr.mxu0 %v591_v0  ;;  %483 = vmatpush3.msra.mxu1 %v591_v0 }
  0x27   :  { %397 = vmatpush3.msra.mxu0 %v591_v0  ;;  %484 = vmatprep.subr.mxu1 %v592_v1 }
  0x28   :  { %398 = vmatprep.subr.mxu0 %v591_v0  ;;  %485 = vmatpush3.msra.mxu1 %v591_v0 }
  0x29   :  { %399 = vmatpush3.msra.mxu0 %v591_v0  ;;  %486 = vmatprep.subr.mxu1 %v592_v1 }
  0x2a   :  { %400 = vmatprep.subr.mxu0 %v591_v0  ;;  %487 = vmatpush3.msra.mxu1 %v591_v0 }
  0x2b   :  { %401 = vmatpush3.msra.mxu0 %v591_v0  ;;  %488 = vmatprep.mubr.msk.f32.mxu1 %vm593_vm1, %v592_v1 }
  0x2c   :  { %402 = vmatprep.subr.mxu0 %v591_v0  ;;  %489 = vmatmul.mubr.msk.f32.vlgmr.msra.gmra.mxu1 %vm110_vm0, %v651_v3 }
  0x2d   :  { %403 = vmatpush3.msra.mxu0 %v591_v0  ;;  %428 = vmatprep.subr.mxu1 %v591_v0 }
  0x2e   :  { %404 = vmatprep.subr.mxu0 %v591_v0  ;;  %429 = vmatpush3.msra.mxu1 %v591_v0 }
  0x2f   :  { %405 = vmatpush3.msra.mxu0 %v591_v0  ;;  %430 = vmatprep.subr.mxu1 %v591_v0 }
  0x30   :  { %406 = vmatprep.subr.mxu0 %v591_v0  ;;  %431 = vmatpush3.msra.mxu1 %v591_v0 }
  0x31   :  { %407 = vmatpush3.msra.mxu0 %v591_v0  ;;  %432 = vmatprep.subr.mxu1 %v591_v0 }
  0x32   :  { %408 = vmatprep.subr.mxu0 %v591_v0  ;;  %433 = vmatpush3.msra.mxu1 %v591_v0 }
  0x33   :  { %409 = vmatpush3.msra.mxu0 %v591_v0  ;;  %434 = vmatprep.subr.mxu1 %v591_v0 }
  0x34   :  { %410 = vmatprep.subr.mxu0 %v591_v0  ;;  %435 = vmatpush3.msra.mxu1 %v591_v0 }
  0x35   :  { %411 = vmatpush3.msra.mxu0 %v591_v0  ;;  %436 = vmatprep.subr.mxu1 %v591_v0 }
  0x36   :  { %412 = vmatprep.subr.mxu0 %v591_v0  ;;  %437 = vmatpush3.msra.mxu1 %v591_v0 }
  0x37   :  { %413 = vmatpush3.msra.mxu0 %v591_v0  ;;  %438 = vmatprep.subr.mxu1 %v591_v0 }
  0x38   :  { %414 = vmatprep.subr.mxu0 %v591_v0  ;;  %439 = vmatpush3.msra.mxu1 %v591_v0 }
  0x39   :  { %415 = vmatpush3.msra.mxu0 %v591_v0  ;;  %440 = vmatprep.subr.mxu1 %v591_v0 }
  0x3a   :  { %104 = vmatmul.mubr.f32.vlgmr.msra.gmra.mxu0 %v682_v4  ;;  %441 = vmatpush3.msra.mxu1 %v591_v0 }
  0x3b   :  { %442 = vmatprep.subr.mxu1 %v591_v0  ;;  %491 = vmatprep.subr.mxu0 %v592_v1 }
  0x3c   :  { %443 = vmatpush3.msra.mxu1 %v591_v0  ;;  %492 = vmatpush3.msra.mxu0 %v591_v0 }
  0x3d   :  { %444 = vmatprep.subr.mxu1 %v591_v0  ;;  %493 = vmatprep.subr.mxu0 %v592_v1 }
  0x3e   :  { %445 = vmatpush3.msra.mxu1 %v591_v0  ;;  %494 = vmatpush3.msra.mxu0 %v591_v0 }
  0x3f   :  { %446 = vmatprep.subr.mxu1 %v591_v0  ;;  %495 = vmatprep.subr.mxu0 %v592_v1 }
  0x40   :  { %447 = vmatpush3.msra.mxu1 %v591_v0  ;;  %496 = vmatpush3.msra.mxu0 %v591_v0 }
  0x41   :  { %448 = vmatprep.subr.mxu1 %v591_v0  ;;  %497 = vmatprep.subr.mxu0 %v592_v1 }
  0x42   :  { %449 = vmatpush3.msra.mxu1 %v591_v0  ;;  %498 = vmatpush3.msra.mxu0 %v591_v0 }
  0x43   :  { %450 = vmatprep.subr.mxu1 %v591_v0  ;;  %499 = vmatprep.subr.mxu0 %v592_v1 }
  0x44   :  { %451 = vmatpush3.msra.mxu1 %v591_v0  ;;  %500 = vmatpush3.msra.mxu0 %v591_v0 }
  0x45   :  { %452 = vmatprep.subr.mxu1 %v591_v0  ;;  %501 = vmatprep.subr.mxu0 %v592_v1 }
  0x46   :  { %453 = vmatpush3.msra.mxu1 %v591_v0  ;;  %502 = vmatpush3.msra.mxu0 %v591_v0 }
  0x47   :  { %454 = vmatprep.subr.mxu1 %v591_v0  ;;  %503 = vmatprep.subr.mxu0 %v592_v1 }
  0x48   :  { %455 = vmatpush3.msra.mxu1 %v591_v0  ;;  %504 = vmatpush3.msra.mxu0 %v591_v0 }
  0x49   :  { %456 = vmatprep.subr.mxu1 %v591_v0  ;;  %505 = vmatprep.subr.mxu0 %v592_v1 }
  0x4a   :  { %457 = vmatpush3.msra.mxu1 %v591_v0  ;;  %506 = vmatpush3.msra.mxu0 %v591_v0 }
  0x4b   :  { %458 = vmatprep.subr.mxu1 %v591_v0  ;;  %507 = vmatprep.mubr.msk.f32.mxu0 %vm593_vm1, %v592_v1 }
  0x4c   :  { %459 = vmatpush3.msra.mxu1 %v591_v0  ;;  %517 = vset.pattern.permute.xlu0 %v594_v5 }
  0x4d   :  { %518 = vset.pattern.permute.xlu1 %v594_v5 }
  0xec   :  { %v180_v6 = vpop.f32.mrf.mxu1 }
  0xed   :  { %v184_v12 = vmul.f32 0.015625, %v180_v6 }
  0xee   :  { %v490_v7 = vpop.f32.mrf.mxu1 }
  0xfa   :  { %v416_v8 = vpop.f32.mrf.mxu0 }
  0xfc   :  { %v417_v9 = vpop.f32.mrf.mxu0 }
  0xfd   :  { %v418_v10 = vadd.f32 %v417_v9, %v416_v8 }
  0xff   :  { %v109_v11 = vmul.f32 0.00390625, %v418_v10 }
 0x101   :  { %187 = vperm.xlu0 %517, %v109_v11  }
 0x105   :  { %194 = vperm.xlu0 %517, %v184_v12  }
 0x17c   :  { %v188_v13 = vpop.permute.xlu0 %187 }
 0x17d   :  { %v190_v14 = vsub.f32 %v682_v4, %v188_v13  ;;  %v191_v15 = vsub.f32 %v631_v2, %v188_v13 }
 0x17f   :  { %v198_v16 = vmul.f32 %v190_v14, %v190_v14  ;;  %v199_v17 = vmul.f32 %v191_v15, %v191_v15 }
 0x180   :  { %v195_v18 = vpop.permute.xlu0 %194 }
 0x181   :  { %v197_v19 = vsub.f32 %v651_v3, %v195_v18  ;;  %264 = vmatprep.mubr.f32.mxu1 %v199_v17 }
 0x182   :  { %265 = vmatmul.mubr.f32.vlgmr.msra.gmra.mxu1 %v198_v16 }
 0x183   :  { %v271_v20 = vmul.f32 %v197_v19, %v197_v19 }
 0x185   :  { %508 = vmatmul.mubr.msk.f32.vlgmr.msra.gmra.mxu0 %vm110_vm0, %v271_v20 }
 0x242   :  { %v460_v21 = vpop.f32.mrf.mxu1 }
 0x244   :  { %v461_v22 = vpop.f32.mrf.mxu1 }
 0x245   :  { %v462_v23 = vadd.f32 %v461_v22, %v460_v21  ;;  %v341_v24 = vpop.f32.mrf.mxu0 }
 0x246   :  { %v345_v28 = vmul.f32 0.015873017, %v341_v24 }
 0x247   :  { %v270_v25 = vmul.f32 0.003921569, %v462_v23  ;;  %v509_v26 = vpop.f32.mrf.mxu0 }
 0x248   :  { %v346_v29 = vadd.f32 1e-05, %v345_v28 }
 0x249   :  { %v347_v27 = vadd.f32 1e-05, %v270_v25 }
 0x24b   :  { %519 = vrcp.f32 %v347_v27 }
 0x258   :  { %v520_v30 = vpop.eup %519 }
 0x259   :  { %v349_v31 = vmul.f32 %v520_v30, %v346_v29 }
 0x25b   :  { %521 = vrsqrt.f32 %v349_v31  ;;  %vm352_vm2 = vcmp.eq.f32.partialorder %v349_v31, inf  ;;  %v355_v34 = vand.u32 2147483648, %v349_v31  ;;  %vm354_vm3 = vcmp.eq.f32.partialorder %v349_v31, 0.0 }
 0x268   :  { %v522_v32 = vpop.eup %521 }
 0x269   :  { %v351_v33 = vmul.f32 %v522_v32, %v349_v31 }
 0x26b   :  { %v353_v35 = vsel %vm352_vm2, %v349_v31, %v351_v33 }
 0x26c   :  { %v356_v36 = vsel %vm354_vm3, %v355_v34, %v353_v35 }
 0x26d   :  { %359 = vperm.xlu1 %518, %v356_v36  }
 0x2e8   :  { %v360_v37 = vpop.permute.xlu1 %359 }
 0x2e9   :  { %v362_v38 = vmul.f32 %v360_v37, %v682_v4  ;;  %v363_v39 = vmul.f32 %v360_v37, %v631_v2 }
 0x2eb   :  { %364 = vst [vmem:[#allocation7] sm:$0xff] %v362_v38  ;;  %365 = vst [vmem:[#allocation7 + $0x8] sm:$0xff] %v363_v39 }
 0x2ec   :  { %574 = shalt.err (!%p571_p0)
}
 0x2ed   :  { %375 = dma.vmem_to_hbm [thread:$0]  %s373_s1, 256, %s738_s2, [#allocation4]  }
 0x2ee   :  { %587 = dma.done.wait [#allocation4], 256  }
 0x2ef   :  { %588 = vsyncadd [#allocation4], 4294967040 }
 0x2f0   :  { %379 = vsyncpa [#allocation3], 1 }
 0x2f1   :  { %380 = vsyncpa [#allocation6], 1 }
 0x2f2   :  { %381 = vsyncpa [#allocation4], 1 }

</bundles_post_ra>
